<compile_context>
chip_gen: v6e
topology: v6e:2x2x1
jax: 0.10.0
libtpu: 0.0.40
codegen_flags: <defaults>
</compile_context>

<pallas_src>
import functools

import jax
import jax.numpy as jnp
from jax.experimental import pallas as pl
from jax.experimental.pallas import tpu as pltpu


def _round_up(x, m):
    return (x + m - 1) // m * m


def _emb_loss_kernel(e_ref, li_ref, lab_ref, valid_ref, w_ref, out_ref):
    t = li_ref.shape[1]                                   # batch rows in this tile
    # One fused (L, D) x (D, 2T) MXU matmul, f32 accumulation. Columns [0, T)
    # are the u_i rows of this tile, columns [T, 2T) its u_j rows; keeping the
    # batch on lanes makes every downstream op lane-dense.
    r = jnp.dot(w_ref[...], e_ref[...], preferred_element_type=jnp.float32)  # (L, 2T)
    li = li_ref[...]                                      # (L, T) bf16 -> f32 on add
    r_i = r[:, :t] + li                                   # static, lane-aligned slices
    r_j = r[:, t:] + li
    # Sublane (XLU) reduce over L on dense vregs -> lane-dense (1, T) result.
    inner = jnp.sum(r_i * r_j, axis=0, keepdims=True)     # (1, T) f32
    x = lab_ref[...] * inner                              # (1, T) f32
    # numerically stable logsigmoid(x) = min(x, 0) - log1p(exp(-|x|))
    logsig = jnp.minimum(x, 0.0) - jnp.log1p(jnp.exp(-jnp.abs(x)))
    partial = -jnp.sum(logsig * valid_ref[...])           # padded rows carry valid == 0
    # Lane-dense splat of the per-tile partial loss (unmasked vst); the wrapper
    # reads element [b, 0, 0] of each tile's block.
    out_ref[...] = jnp.broadcast_to(partial, out_ref.shape)


def multi_network_emb_loss(embedding, l_embedding, w, u_i, u_j, this_layer, label,
                           *, tile_b=8192):
    """Forward loss of MultiNetworkEmb (sum of -logsigmoid(label * <r_i, r_j>))."""
    B = u_i.shape[0]
    D = embedding.shape[1]
    L = l_embedding.shape[1]

    # Batch tile: multiple of 128 (lane-dense chain & labels), capped at the
    # (rounded) batch size.
    tile_b = max(128, min(_round_up(tile_b, 128), _round_up(B, 128)))
    # v7x has 2 TensorCores: make sure the "parallel" grid axis has >= 2 steps
    # whenever the batch allows it.
    while tile_b > 128 and _round_up(B, tile_b) // tile_b < 2:
        new_tile = _round_up(tile_b // 2, 128)
        if new_tile == tile_b:
            break
        tile_b = new_tile
    Bp = _round_up(B, tile_b)
    pad = Bp - B
    num_tiles = Bp // tile_b

    ui = jnp.pad(u_i, (0, pad)) if pad else u_i
    uj = jnp.pad(u_j, (0, pad)) if pad else u_j
    tl = jnp.pad(this_layer, (0, pad)) if pad else this_layer
    lab = label.astype(jnp.float32)
    lab = (jnp.pad(lab, (0, pad)) if pad else lab).reshape(1, Bp)
    valid = (jnp.arange(Bp, dtype=jnp.int32) < B).astype(jnp.float32).reshape(1, Bp)

    # Tile-major interleave of indices: block b of the gathered matrix holds the
    # T u_i rows of tile b followed by its T u_j rows -> one fused matmul/tile.
    idx = jnp.stack(
        [ui.reshape(num_tiles, tile_b), uj.reshape(num_tiles, tile_b)], axis=1
    ).reshape(2 * Bp)

    # bf16 matmul / layer-embedding operands (halves HBM+VMEM traffic); batch on
    # the lane axis so all VMEM blocks are dense (no 128-lane padding).
    e_t = jnp.take(embedding, idx, axis=0).astype(jnp.bfloat16).T     # (D, 2*Bp)
    li_t = jnp.take(l_embedding, tl, axis=0).astype(jnp.bfloat16).T   # (L, Bp)
    w_t = w.T.astype(jnp.bfloat16)                                    # (L, D)

    partials = pl.pallas_call(
        _emb_loss_kernel,
        out_shape=jax.ShapeDtypeStruct((num_tiles, 8, 128), jnp.float32),
        grid=(num_tiles,),
        in_specs=[
            pl.BlockSpec((D, 2 * tile_b), lambda b: (0, b)),   # stacked i/j columns
            pl.BlockSpec((L, tile_b), lambda b: (0, b)),       # layer embeddings (bf16)
            pl.BlockSpec((1, tile_b), lambda b: (0, b)),       # labels, lane-dense
            pl.BlockSpec((1, tile_b), lambda b: (0, b)),       # validity mask
            pl.BlockSpec((L, D), lambda b: (0, 0)),            # W^T resident across steps
        ],
        out_specs=pl.BlockSpec((1, 8, 128), lambda b: (b, 0, 0)),
        compiler_params=pltpu.CompilerParams(
            dimension_semantics=("parallel",),                 # 2-TC sharding on v7x
            vmem_limit_bytes=32 * 1024 * 1024,                 # safe on v5e/v6e/v7x
            allow_input_fusion=[True] * 5,                     # let XLA fuse producers
        ),
        cost_estimate=pl.CostEstimate(
            flops=2 * (2 * Bp) * D * L + 6 * Bp,
            transcendentals=2 * Bp,
            bytes_accessed=(
                2 * Bp * D * (4 + 2 + 2)      # gather: read f32 rows, write + re-read bf16
                + Bp * L * (4 + 2 + 2)        # layer-embedding gather + kernel read
                + 2 * Bp * 4                  # labels + validity
                + D * L * 2                   # W^T
                + num_tiles * 8 * 128 * 4     # partial-loss blocks
            ),
        ),
    )(e_t, li_t, lab, valid, w_t)

    # Per-tile partial losses were splatted over (8,128); take lane 0 and sum.
    return jnp.sum(partials[:, 0, 0])


def init_params(key, num_of_nodes, node_embedding, num_layer, layer_embedding):
    k1, k2, k3 = jax.random.split(key, 3)

    def trunc_norm(k, shape, std=0.3):
        # torch.nn.init.trunc_normal_ truncates at absolute [-2, 2]
        return std * jax.random.truncated_normal(
            k, -2.0 / std, 2.0 / std, shape, jnp.float32)

    def l2_normalize_rows(x, eps=1e-12):
        n = jnp.sqrt(jnp.sum(x * x, axis=1, keepdims=True))
        return x / jnp.maximum(n, eps)

    emb = l2_normalize_rows(trunc_norm(k1, (num_of_nodes, node_embedding)))
    lemb = l2_normalize_rows(trunc_norm(k2, (num_layer + 1, layer_embedding)))
    w = l2_normalize_rows(trunc_norm(k3, (node_embedding, layer_embedding)))
    return emb, lemb, w


def ref_loss_f32(embedding, l_embedding, w, u_i, u_j, this_layer, label):
    r_i = embedding[u_i] @ w + l_embedding[this_layer]
    r_j = embedding[u_j] @ w + l_embedding[this_layer]
    inner = jnp.sum(r_i * r_j, axis=1)
    x = label.astype(jnp.float32) * inner
    logsig = jnp.minimum(x, 0.0) - jnp.log1p(jnp.exp(-jnp.abs(x)))
    return -jnp.sum(logsig)


def ref_loss_bf16(embedding, l_embedding, w, u_i, u_j, this_layer, label):
    # Mirrors the kernel's bf16 matmul / layer-embedding operands, f32 accumulation.
    wb = w.astype(jnp.bfloat16)
    eb = embedding.astype(jnp.bfloat16)
    pi = jnp.dot(eb[u_i], wb, preferred_element_type=jnp.float32)
    pj = jnp.dot(eb[u_j], wb, preferred_element_type=jnp.float32)
    li = l_embedding[this_layer].astype(jnp.bfloat16).astype(jnp.float32)
    inner = jnp.sum((pi + li) * (pj + li), axis=1)
    x = label.astype(jnp.float32) * inner
    logsig = jnp.minimum(x, 0.0) - jnp.log1p(jnp.exp(-jnp.abs(x)))
    return -jnp.sum(logsig)


if __name__ == "__main__":
    num_of_nodes = 64
    node_embedding = 32
    num_layer = 3
    layer_embedding = 16

    key = jax.random.PRNGKey(0)
    kp = jax.random.fold_in(key, 0)

    embedding, l_embedding, w = init_params(
        kp, num_of_nodes, node_embedding, num_layer, layer_embedding)

    # Case 1: B=8,   default tile_b -> single 128-row tile, 120 masked pad rows.
    # Case 2: B=300, default tile_b -> auto-halved to 2 tiles of 256 (v7x 2-TC path).
    # Case 3: B=300, tile_b=128     -> 3 tiles + 84 masked pad rows.
    for batch_size, tb in ((8, 8192), (300, 8192), (300, 128)):
        ki, kj, kl, kb = jax.random.split(
            jax.random.fold_in(key, 1000 * batch_size + tb), 4)
        u_i = jax.random.randint(ki, (batch_size,), 0, num_of_nodes, dtype=jnp.int32)
        u_j = jax.random.randint(kj, (batch_size,), 0, num_of_nodes, dtype=jnp.int32)
        this_layer = jax.random.randint(kl, (batch_size,), 0, num_layer + 1,
                                        dtype=jnp.int32)
        label = (2.0 * jax.random.bernoulli(kb, 0.5, (batch_size,)).astype(jnp.float32)
                 - 1.0)

        loss = multi_network_emb_loss(embedding, l_embedding, w,
                                      u_i, u_j, this_layer, label, tile_b=tb)
        loss = jax.block_until_ready(loss)

        exp_bf16 = ref_loss_bf16(embedding, l_embedding, w, u_i, u_j, this_layer, label)
        assert jnp.allclose(loss, exp_bf16, rtol=1e-3, atol=1e-3), (
            batch_size, tb, loss, exp_bf16)
        exp_f32 = ref_loss_f32(embedding, l_embedding, w, u_i, u_j, this_layer, label)
        assert jnp.allclose(loss, exp_f32, rtol=5e-2, atol=5e-2), (
            batch_size, tb, loss, exp_f32)

    print("KERNEL_OK")
</pallas_src>

<mosaic_0001>
module attributes {stable_mosaic.version = 11 : i64} {
  func.func @_emb_loss_kernel(%arg0: i32, %arg1: memref<32x256xbf16, #tpu.memory_space<vmem>>, %arg2: memref<16x128xbf16, #tpu.memory_space<vmem>>, %arg3: memref<1x128xf32, #tpu.memory_space<vmem>>, %arg4: memref<1x128xf32, #tpu.memory_space<vmem>>, %arg5: memref<16x32xbf16, #tpu.memory_space<vmem>>, %arg6: memref<1x8x128xf32, #tpu.memory_space<vmem>>) attributes {dimension_semantics = [#tpu.dimension_semantics<parallel>], iteration_bounds = array<i64: 1>, scalar_prefetch = 0 : i64, scratch_operands = 0 : i64, tpu.core_type = #tpu.core_type<tc>, window_params = [{transform_indices = @transform_0, window_bounds = array<i64: 32, 256>}, {transform_indices = @transform_1, window_bounds = array<i64: 16, 128>}, {transform_indices = @transform_2, window_bounds = array<i64: 1, 128>}, {transform_indices = @transform_3, window_bounds = array<i64: 1, 128>}, {pipeline_mode = #tpu.pipeline_mode<synchronous>, transform_indices = @transform_4, window_bounds = array<i64: 16, 32>}, {transform_indices = @transform_5, window_bounds = array<i64: 1, 8, 128>}]} {
    %c0 = arith.constant 0 : index
    %c0_0 = arith.constant 0 : index
    %0 = vector.load %arg5[%c0, %c0_0] : memref<16x32xbf16, #tpu.memory_space<vmem>>, vector<16x32xbf16>
    %c0_1 = arith.constant 0 : index
    %c0_2 = arith.constant 0 : index
    %1 = vector.load %arg1[%c0_1, %c0_2] : memref<32x256xbf16, #tpu.memory_space<vmem>>, vector<32x256xbf16>
    %cst = arith.constant dense<0.000000e+00> : vector<16x256xf32>
    %2 = tpu.matmul %0, %1, %cst {dimension_numbers = #tpu.dot_dimension_numbers<[1], [0], [0], [1], [0, 0, 1, 1], [], []>} : vector<16x32xbf16>, vector<32x256xbf16>, vector<16x256xf32> -> vector<16x256xf32>
    %c0_3 = arith.constant 0 : index
    %c0_4 = arith.constant 0 : index
    %3 = vector.load %arg2[%c0_3, %c0_4] : memref<16x128xbf16, #tpu.memory_space<vmem>>, vector<16x128xbf16>
    %4 = vector.extract_strided_slice %2 {offsets = [0, 0], sizes = [16, 128], strides = [1, 1]} : vector<16x256xf32> to vector<16x128xf32>
    %5 = arith.extf %3 : vector<16x128xbf16> to vector<16x128xf32>
    %6 = arith.addf %4, %5 : vector<16x128xf32>
    %7 = vector.extract_strided_slice %2 {offsets = [0, 128], sizes = [16, 128], strides = [1, 1]} : vector<16x256xf32> to vector<16x128xf32>
    %8 = arith.extf %3 : vector<16x128xbf16> to vector<16x128xf32>
    %9 = arith.addf %7, %8 : vector<16x128xf32>
    %10 = arith.mulf %6, %9 : vector<16x128xf32>
    %cst_5 = arith.constant dense<0.000000e+00> : vector<128xf32>
    %11 = vector.multi_reduction <add>, %10, %cst_5 [0] : vector<16x128xf32> to vector<128xf32>
    %12 = vector.shape_cast %11 : vector<128xf32> to vector<1x128xf32>
    %c0_6 = arith.constant 0 : index
    %c0_7 = arith.constant 0 : index
    %13 = vector.load %arg3[%c0_6, %c0_7] : memref<1x128xf32, #tpu.memory_space<vmem>>, vector<1x128xf32>
    %14 = arith.mulf %13, %12 : vector<1x128xf32>
    %cst_8 = arith.constant 0.000000e+00 : f32
    %15 = vector.broadcast %cst_8 : f32 to vector<1x128xf32>
    %16 = arith.minimumf %14, %15 : vector<1x128xf32>
    %17 = math.absf %14 : vector<1x128xf32>
    %cst_9 = arith.constant 0.000000e+00 : f32
    %18 = vector.broadcast %cst_9 : f32 to vector<1x128xf32>
    %19 = arith.subf %18, %17 : vector<1x128xf32>
    %20 = math.exp %19 : vector<1x128xf32>
    %21 = math.log1p %20 : vector<1x128xf32>
    %22 = arith.subf %16, %21 : vector<1x128xf32>
    %c0_10 = arith.constant 0 : index
    %c0_11 = arith.constant 0 : index
    %23 = vector.load %arg4[%c0_10, %c0_11] : memref<1x128xf32, #tpu.memory_space<vmem>>, vector<1x128xf32>
    %24 = arith.mulf %22, %23 : vector<1x128xf32>
    %25 = vector.shape_cast %24 : vector<1x128xf32> to vector<1x1x128xf32>
    %cst_12 = arith.constant dense<0.000000e+00> : vector<1xf32>
    %26 = vector.multi_reduction <add>, %25, %cst_12 [1, 2] : vector<1x1x128xf32> to vector<1xf32>
    %27 = vector.shape_cast %26 : vector<1xf32> to vector<1x1x1xf32>
    %28 = vector.extract %27[0, 0, 0] : f32 from vector<1x1x1xf32>
    %cst_13 = arith.constant 0.000000e+00 : f32
    %29 = arith.subf %cst_13, %28 : f32
    %30 = vector.broadcast %29 : f32 to vector<1x8x128xf32>
    %c0_14 = arith.constant 0 : index
    %c0_15 = arith.constant 0 : index
    %c0_16 = arith.constant 0 : index
    %31 = vector.load %arg6[%c0_14, %c0_15, %c0_16] : memref<1x8x128xf32, #tpu.memory_space<vmem>>, vector<1x8x128xf32>
    tpu.vector_store %arg6[%c0_14, %c0_15, %c0_16], %30 {strides = array<i32>} : memref<1x8x128xf32, #tpu.memory_space<vmem>>, vector<1x8x128xf32>,
    return
  }
  func.func @transform_0(%arg0: i32) -> (i32, i32) {
    %c0_i32 = arith.constant 0 : i32
    %c0_i32_0 = arith.constant 0 : i32
    return %c0_i32, %arg0 : i32, i32
  }
  func.func @transform_1(%arg0: i32) -> (i32, i32) {
    %c0_i32 = arith.constant 0 : i32
    %c0_i32_0 = arith.constant 0 : i32
    return %c0_i32, %arg0 : i32, i32
  }
  func.func @transform_2(%arg0: i32) -> (i32, i32) {
    %c0_i32 = arith.constant 0 : i32
    %c0_i32_0 = arith.constant 0 : i32
    return %c0_i32, %arg0 : i32, i32
  }
  func.func @transform_3(%arg0: i32) -> (i32, i32) {
    %c0_i32 = arith.constant 0 : i32
    %c0_i32_0 = arith.constant 0 : i32
    return %c0_i32, %arg0 : i32, i32
  }
  func.func @transform_4(%arg0: i32) -> (i32, i32) {
    %c0_i32 = arith.constant 0 : i32
    %c0_i32_0 = arith.constant 0 : i32
    %c0_i32_1 = arith.constant 0 : i32
    return %c0_i32, %c0_i32_0 : i32, i32
  }
  func.func @transform_5(%arg0: i32) -> (i32, i32, i32) {
    %c0_i32 = arith.constant 0 : i32
    %c0_i32_0 = arith.constant 0 : i32
    %c0_i32_1 = arith.constant 0 : i32
    return %arg0, %c0_i32, %c0_i32_0 : i32, i32, i32
  }
}

</mosaic_0001>

<bundles_post_ra>
// kernel: tpu_custom_call.1
= control target key start
LH: loop header
LB: loop body
LE: loop exit
PB: predicated region body
PF: predicated region fallthrough
CT: control target
= control target key end

     0   :  { %10 = vsyncpa [#allocation3], 0  ;;  %s382_s0 = inlined_call_operand.hbm [shape: bf16[32,256], index: 0, kind: input, shape index: {}]   ;;  %s383_s1 = inlined_call_operand.hbm [shape: bf16[16,128], index: 1, kind: input, shape index: {}]   ;;  %s384_s2 = inlined_call_operand.vmem [shape: f32[1,128], index: 2, kind: input, shape index: {}]   ;;  %s385_s3 = inlined_call_operand.vmem [shape: f32[1,128], index: 3, kind: input, shape index: {}]   ;;  %s386_s4 = inlined_call_operand.hbm [shape: bf16[16,32], index: 4, kind: input, shape index: {}]   ;;  %s387_s5 = inlined_call_operand.hbm [shape: f32[1,8,128], index: 5, kind: output, shape index: {}]  }
   0x1   :  { %11 = vsyncpa [#allocation6], 0 }
   0x2   :  { %12 = vsyncpa [#allocation4], 0  ;;  %s325_s18 = smov [#allocation5]  }
   0x3   :  { %s30_s19 = sshll.u32 %s325_s18, 4  ;;  %s31_s19 = int_to_ptr.vmem [resolvable:$true] %s30_s19 }
   0x4   :  { %s247_s20 = scalar_lea.vmem %s31_s19, 128  ;;  %p252_p1 = scmp.lt.s32.totalorder %s31_s19, %s31_s19 }
   0x5   :  { %p248_p0 = scmp.ne.s32.totalorder %s31_s19, %s247_s20  ;;  %p253_p2 = scmp.lt.s32.totalorder %s247_s20, %s247_s20 }
   0x7   :  { %p254_p3 = por %p253_p2, %p252_p1 }
   0x9   :  { %p255_p4 = pnand %p254_p3, %p248_p0 }
   0xb   :  { %258 = shalt.err (!%p255_p4)
}
   0xc   :  { %s326_s21 = smov 64   ;;  %s327_s22 = smov 4  }
   0xd   :  { %36 = dma.hbm_to_vmem [thread:$0]  %s383_s1, 128, %s31_s19, [#allocation6], %s326_s21, %s326_s21, %s327_s22  }
   0xe   :  { %s328_s25 = smov [#allocation2]  }
   0xf   :  { %s18_s26 = sshll.u32 %s328_s25, 4  ;;  %s19_s26 = int_to_ptr.vmem [resolvable:$true] %s18_s26 }
  0x10   :  { %s267_s27 = scalar_lea.vmem %s19_s26, 512  ;;  %p272_p6 = scmp.lt.s32.totalorder %s19_s26, %s19_s26 }
  0x11   :  { %p268_p5 = scmp.ne.s32.totalorder %s19_s26, %s267_s27  ;;  %p273_p7 = scmp.lt.s32.totalorder %s267_s27, %s267_s27 }
  0x13   :  { %p274_p8 = por %p273_p7, %p272_p6 }
  0x15   :  { %p275_p9 = pnand %p274_p8, %p268_p5 }
  0x17   :  { %278 = shalt.err (!%p275_p9)
}
  0x18   :  { %s329_s28 = smov 128   ;;  %s330_s29 = smov 8  }
  0x19   :  { %24 = dma.hbm_to_vmem [thread:$0]  %s382_s0, 512, %s19_s26, [#allocation3], %s329_s28, %s329_s28, %s330_s29  }
  0x1a   :  { %s331_s7 = smov [#allocation7]  }
  0x1b   :  { %s46_s8 = sshll.u32 %s331_s7, 4  ;;  %s47_s8 = int_to_ptr.vmem [resolvable:$true] %s46_s8 }
  0x1c   :  { %s287_s1 = scalar_lea.vmem %s47_s8, 128  ;;  %p292_p11 = scmp.lt.s32.totalorder %s47_s8, %s47_s8 }
  0x1d   :  { %p288_p10 = scmp.ne.s32.totalorder %s47_s8, %s287_s1  ;;  %p293_p12 = scmp.lt.s32.totalorder %s287_s1, %s287_s1 }
  0x1f   :  { %p294_p13 = por %p293_p12, %p292_p11 }
  0x21   :  { %p295_p0 = pnand %p294_p13, %p288_p10 }
  0x23   :  { %298 = shalt.err (!%p295_p0)
}
  0x24   :  { %52 = dma.hbm_to_vmem [thread:$0]  %s386_s4, 128, %s47_s8, [#allocation6], %s326_s21, %s326_s21, %s327_s22  }
  0x25   :  { %319 = dma.done.wait [#allocation3], 512  }
  0x26   :  { %320 = vsyncadd [#allocation3], 4294966784 }
  0x27   :  { %321 = dma.done.wait [#allocation6], 256  }
  0x28   :  { %322 = vsyncadd [#allocation6], 4294967040  ;;  %v332_v0 = vmov 0   ;;  %v228_v1 = vld [vmem:[#allocation2 + $0x14] ss:$8 sps:$4 sm:$0xff]   ;;  %v234_v5 = vld [vmem:[#allocation7] sm:$0xff]  }
  0x29   :  { %130 = vmatprep.mubr.bf16.mxu0 %v332_v0  ;;  %v230_v2 = vld [vmem:[#allocation2 + $0x10] ss:$8 sps:$4 sm:$0xff]   ;;  %110 = vmatprep.subr.bf16.mxu0 %v228_v1  ;;  %v231_v3 = vld [vmem:[#allocation2 + $0x4] ss:$8 sps:$4 sm:$0xff]   ;;  %v233_v4 = vld [vmem:[#allocation2] ss:$8 sps:$4 sm:$0xff]  }
  0x2a   :  { %111 = vmatpush1.bf16.msra.mxu0 %v230_v2  ;;  %vm94_vm0 = vcmask 261120   ;;  %v214_v7 = vld [vmem:[#allocation5] sm:$0xff]   ;;  %vm177_vm2 = vcmask 1040384   ;;  %s333_s12 = smov [#allocation8]  }
  0x2b   :  { %112 = vmatprep.subr.bf16.mxu0 %v231_v3  ;;  %v215_v9 = vunpack.c.l.bf16 %v214_v7  ;;  %v216_v10 = vunpack.c.h.bf16 %v214_v7  ;;  %v158_v25 = vld [vmem:[%s384_s2] sm:$0x1]  ;;  %s197_s13 = sshll.u32 %s333_s12, 4  ;;  %s198_s13 = int_to_ptr.vmem [resolvable:$true] %s197_s13 }
  0x2c   :  { %v175_v41 = vld [vmem:[%s385_s3] sm:$0x1]  ;;  %s299_s3 = scalar_lea.vmem %s198_s13, 128  ;;  %p304_p2 = scmp.lt.s32.totalorder %s198_s13, %s198_s13 }
  0x2d   :  { %p300_p1 = scmp.ne.s32.totalorder %s198_s13, %s299_s3  ;;  %p305_p3 = scmp.lt.s32.totalorder %s299_s3, %s299_s3 }
  0x2e   :  { %113 = vmatpush1.bf16.msra.mxu0 %v233_v4 }
  0x2f   :  { %p306_p4 = por %p305_p3, %p304_p2 }
  0x31   :  { %212 = vmatmul.mubr.msk.bf16.vlgmr.msra.gmra.mxu0 %vm94_vm0, %v234_v5  ;;  %p307_p5 = pnand %p306_p4, %p300_p1 }
  0xf1   :  { %v132_v6 = vpop.f32.mrf.mxu0 }
  0xf2   :  { %v145_v14 = vadd.f32 %v215_v9, %v132_v6 }
  0xf3   :  { %v134_v8 = vpop.f32.mrf.mxu0 }
  0xf4   :  { %v147_v12 = vadd.f32 %v215_v9, %v134_v8 }
  0xf5   :  { %v136_v11 = vpop.f32.mrf.mxu0 }
  0xf6   :  { %v146_v15 = vadd.f32 %v216_v10, %v136_v11  ;;  %v149_v17 = vmul.f32 %v147_v12, %v145_v14 }
  0xf7   :  { %v138_v13 = vpop.f32.mrf.mxu0 }
  0xf8   :  { %v148_v16 = vadd.f32 %v216_v10, %v138_v13 }
  0xfa   :  { %v150_v18 = vmul.f32 %v148_v16, %v146_v15 }
  0xfc   :  { %v151_v19 = vadd.f32 %v150_v18, %v149_v17 }
  0xfe   :  { %v152_v20 = vrot.slane %v151_v19, 4 }
 0x100   :  { %v153_v21 = vadd.f32 %v152_v20, %v151_v19 }
 0x102   :  { %v154_v22 = vrot.slane %v153_v21, 2 }
 0x104   :  { %v155_v23 = vadd.f32 %v154_v22, %v153_v21 }
 0x106   :  { %v156_v24 = vrot.slane %v155_v23, 1 }
 0x108   :  { %v157_v26 = vadd.f32 %v156_v24, %v155_v23 }
 0x10a   :  { %v159_v27 = vmul.f32 %v158_v25, %v157_v26 }
 0x10c   :  { %v161_v28 = vand.u32 2147483647, %v159_v27  ;;  %v160_v39 = vmin.f32 %v159_v27, 0.0 }
 0x10e   :  { %v162_v29 = vsub.f32 0.0, %v161_v28 }
 0x110   :  { %v163_v30 = vmul.f32 1.442695, %v162_v29 }
 0x112   :  { %235 = vpow2.f32 %v163_v30 }
 0x11f   :  { %v236_v31 = vpop.eup %235 }
 0x120   :  { %v165_v32 = vadd.f32 1.0, %v236_v31  ;;  %v168_v33 = vmul.f32 -0.5, %v236_v31  ;;  %v171_v35 = vand.u32 2147483647, %v236_v31 }
 0x122   :  { %237 = vlog2.f32 %v165_v32  ;;  %v169_v34 = vadd.f32 1.0, %v168_v33  ;;  %vm172_vm1 = vcmp.lt.f32.partialorder %v171_v35, 0.0004427343 }
 0x124   :  { %v170_v38 = vmul.f32 %v236_v31, %v169_v34 }
 0x12f   :  { %v238_v36 = vpop.eup %237 }
 0x130   :  { %v167_v37 = vmul.f32 0.6931472, %v238_v36 }
 0x132   :  { %v173_v40 = vsel %vm172_vm1, %v170_v38, %v167_v37 }
 0x133   :  { %v174_v42 = vsub.f32 %v160_v39, %v173_v40 }
 0x135   :  { %v176_v43 = vmul.f32 %v175_v41, %v174_v42 }
 0x137   :  { %v178_v44 = vsel %vm177_vm2, %v176_v43, 0.0 }
 0x138   :  { %179 = vadd.xlane.f32.xlu0 %v178_v44 }
 0x1c1   :  { %v180_v45 = vpop.xlane.xlu0 %179 }
 0x1c2   :  { %v181_v46 = vrot.slane %v180_v45, 4 }
 0x1c4   :  { %v182_v47 = vadd.f32 %v181_v46, %v180_v45 }
 0x1c6   :  { %v183_v48 = vrot.slane %v182_v47, 2 }
 0x1c8   :  { %v184_v49 = vadd.f32 %v183_v48, %v182_v47 }
 0x1ca   :  { %v185_v50 = vrot.slane %v184_v49, 1 }
 0x1cc   :  { %v186_v51 = vadd.f32 %v185_v50, %v184_v49 }
 0x1ce   :  { %217 = vpush %v186_v51 }
 0x1ff   :  { %s218_s14 = spop %217 }
 0x200   :  { %s188_s15 = ssub.f32 0.0, %s218_s14 }
 0x202   :  { %v189_v52 = vstv %s188_s15 }
 0x203   :  { %190 = vst [vmem:[#allocation8] sm:$0xff] %v189_v52 }
 0x204   :  { %310 = shalt.err (!%p307_p5)
}
 0x205   :  { %200 = dma.vmem_to_hbm [thread:$0]  %s198_s13, 128, %s387_s5, [#allocation4]  }
 0x206   :  { %323 = dma.done.wait [#allocation4], 128  }
 0x207   :  { %324 = vsyncadd [#allocation4], 4294967168 }
 0x208   :  { %204 = vsyncpa [#allocation3], 1 }
 0x209   :  { %205 = vsyncpa [#allocation6], 1 }
 0x20a   :  { %206 = vsyncpa [#allocation4], 1 }

</bundles_post_ra>
